<compile_context>
chip_gen: v7x
topology: tpu7x:2x2x1
jax: 0.10.0
libtpu: 0.0.40
codegen_flags: <defaults>
</compile_context>

<pallas_src>
import jax
import jax.numpy as jnp
from jax.experimental import pallas as pl
from jax.experimental.pallas import tpu as pltpu


def _round_up(x, m):
    return ((x + m - 1) // m) * m


def _scorer_kernel(qc_ref, ts_ref, ro_ref, wq_ref, wt_ref, b_ref, o_ref):
    # state = [qc, ts] @ W + b   (concat folded into a split matmul on the MXU)
    state = jnp.dot(qc_ref[...], wq_ref[...], preferred_element_type=jnp.float32)
    state = state + jnp.dot(ts_ref[...], wt_ref[...], preferred_element_type=jnp.float32)
    state = state + b_ref[...]                                    # (1, H) f32 broadcast
    # inner product with the rule options, reduced over the hidden (lane) axis, in f32
    logits = jnp.sum(ro_ref[...].astype(jnp.float32) * state, axis=-1)   # (TM,)
    # lane-dense store: (TM,) -> (1, 1, TM)  (sublane->lane relayout goes to the XLU)
    o_ref[...] = logits.reshape(o_ref.shape).astype(o_ref.dtype)


def _pick_tile_and_vmem(M, H, itemsize, vmem_budget_bytes):
    """Pick the row tile: biggest tile that fits VMEM, trading per-step overhead
    against padded-row HBM traffic (the kernel is HBM-bound)."""

    def footprint(tm):
        streamed = 3 * 2 * tm * H * itemsize       # qc / ts / ro, double-buffered
        weights = 2 * 2 * H * H * itemsize         # wq / wt (resident, 2 bufs allocated)
        bias = 2 * H * 4
        out = 2 * tm * 4
        return streamed + weights + bias + out

    if M <= 128:
        tm = _round_up(max(M, 8), 8)               # tiny problem: one (padded) tile
    else:
        m128 = _round_up(M, 128)
        cands = sorted({min(t, m128) for t in (128, 256, 512, 1024, 2048)})
        cands = [t for t in cands if footprint(t) <= vmem_budget_bytes] or [128]

        step_us = 0.35                             # ~per-grid-step overhead
        bw_bytes_per_us = 1.0e6                    # ~1 TB/s effective HBM bandwidth

        def cost(tm):
            mp = _round_up(M, tm)
            traffic = mp * 3 * H * itemsize        # streamed bytes incl. padded rows
            return traffic / bw_bytes_per_us + (mp // tm) * step_us

        tm = min(cands, key=lambda t: (cost(t), -t))

    # Explicit scoped-VMEM limit; capped at 64 MiB so it is valid on v7x too.
    vmem_limit = min(64 * 1024 * 1024,
                     max(16 * 1024 * 1024, int(footprint(tm) * 1.5) + (2 << 20)))
    return tm, vmem_limit


def concat_inner_product_scorer(rule_option, query_context, tree_state, weight, bias,
                                *, compute_dtype=jnp.bfloat16,
                                vmem_budget_bytes=40 * 1024 * 1024):
    """rule_option/query_context/tree_state: (B, O, H); weight: (2H, H); bias: (H,).

    Returns float32 logits of shape (B, O).
    """
    B, O, H = rule_option.shape
    M = B * O
    itemsize = jnp.dtype(compute_dtype).itemsize
    TM, vmem_limit = _pick_tile_and_vmem(M, H, itemsize, vmem_budget_bytes)
    Mp = _round_up(M, TM)
    G = Mp // TM

    def prep(x):
        x = x.reshape(M, H).astype(compute_dtype)
        if Mp != M:
            x = jnp.pad(x, ((0, Mp - M), (0, 0)))
        return x

    qc = prep(query_context)
    ts = prep(tree_state)
    ro = prep(rule_option)
    wq = weight[:H, :].astype(compute_dtype)     # applied to the query_context half
    wt = weight[H:, :].astype(compute_dtype)     # applied to the tree_state half
    b2 = bias.reshape(1, H).astype(jnp.float32)

    row_spec = pl.BlockSpec((TM, H), lambda i: (i, 0))          # streamed row tiles
    resident = lambda shape: pl.BlockSpec(shape, lambda i: tuple(0 for _ in shape))

    out = pl.pallas_call(
        _scorer_kernel,
        out_shape=jax.ShapeDtypeStruct((G, 1, TM), jnp.float32),
        grid=(G,),
        in_specs=[
            row_spec,               # query_context
            row_spec,               # tree_state
            row_spec,               # rule_option
            resident((H, H)),       # W_q   (stays in VMEM across the whole grid)
            resident((H, H)),       # W_t
            resident((1, H)),       # bias
        ],
        out_specs=pl.BlockSpec((1, 1, TM), lambda i: (i, 0, 0)),
        compiler_params=pltpu.CompilerParams(
            dimension_semantics=("parallel",),     # megacore sharding on v7x
            vmem_limit_bytes=vmem_limit,
        ),
    )(qc, ts, ro, wq, wt, b2)

    return out.reshape(Mp)[:M].reshape(B, O)


def reference(rule_option, query_context, tree_state, weight, bias):
    cat = jnp.concatenate([query_context, tree_state], axis=-1)            # (B, O, 2H)
    state = jnp.einsum("boc,ch->boh", cat, weight,
                       precision=jax.lax.Precision.HIGHEST) + bias         # Linear(2H->H)
    return jnp.sum(rule_option * state, axis=-1)                           # (B, O)


if __name__ == "__main__":
    def make_inputs(B, O, H, key):
        k1, k2, k3, k4, k5 = jax.random.split(key, 5)
        ro = jax.random.normal(k1, (B, O, H), dtype=jnp.float32)
        qc = jax.random.normal(k2, (B, O, H), dtype=jnp.float32)
        ts = jax.random.normal(k3, (B, O, H), dtype=jnp.float32)
        # Deterministic stand-in MultiInputsSequential: Linear(2H, H)
        w = jax.random.normal(k4, (2 * H, H), dtype=jnp.float32) * 0.05
        b = jax.random.normal(k5, (H,), dtype=jnp.float32) * 0.05
        return ro, qc, ts, w, b

    # Small shape from the module spec: batch=2, opt_num=8, hid=32.
    ro, qc, ts, w, b = make_inputs(2, 8, 32, jax.random.PRNGKey(0))
    ref = reference(ro, qc, ts, w, b)

    # f32 compute path: tight numerical check of the kernel structure.
    out_f32 = jax.block_until_ready(
        concat_inner_product_scorer(ro, qc, ts, w, b, compute_dtype=jnp.float32))
    assert out_f32.shape == (2, 8)
    assert jnp.allclose(out_f32, ref, atol=1e-4, rtol=1e-4), (out_f32, ref)

    # Default bf16 streaming path (halves HBM traffic): looser tolerance.
    out_bf16 = jax.block_until_ready(concat_inner_product_scorer(ro, qc, ts, w, b))
    assert out_bf16.shape == (2, 8)
    assert jnp.allclose(out_bf16, ref, atol=5e-2, rtol=5e-2), (out_bf16, ref)

    # Shape that exercises the row grid: multiple tiles, tail padding, resident weights.
    ro2, qc2, ts2, w2, b2 = make_inputs(4, 640, 128, jax.random.PRNGKey(1))
    ref2 = reference(ro2, qc2, ts2, w2, b2)
    out2_f32 = jax.block_until_ready(
        concat_inner_product_scorer(ro2, qc2, ts2, w2, b2, compute_dtype=jnp.float32))
    assert out2_f32.shape == (4, 640)
    assert jnp.allclose(out2_f32, ref2, atol=1e-3, rtol=1e-3), "tiled f32 mismatch"
    out2_bf16 = jax.block_until_ready(concat_inner_product_scorer(ro2, qc2, ts2, w2, b2))
    assert jnp.allclose(out2_bf16, ref2, atol=3e-1, rtol=5e-2), "tiled bf16 mismatch"

    print("KERNEL_OK")
</pallas_src>

<mosaic_0001>
module attributes {stable_mosaic.version = 11 : i64} {
  func.func @_scorer_kernel(%arg0: i32, %arg1: memref<16x32xf32, #tpu.memory_space<vmem>>, %arg2: memref<16x32xf32, #tpu.memory_space<vmem>>, %arg3: memref<16x32xf32, #tpu.memory_space<vmem>>, %arg4: memref<32x32xf32, #tpu.memory_space<vmem>>, %arg5: memref<32x32xf32, #tpu.memory_space<vmem>>, %arg6: memref<1x32xf32, #tpu.memory_space<vmem>>, %arg7: memref<1x1x16xf32, #tpu.memory_space<vmem>>) attributes {dimension_semantics = [#tpu.dimension_semantics<parallel>], iteration_bounds = array<i64: 1>, scalar_prefetch = 0 : i64, scratch_operands = 0 : i64, tpu.core_type = #tpu.core_type<tc>, window_params = [{transform_indices = @transform_0, window_bounds = array<i64: 16, 32>}, {transform_indices = @transform_1, window_bounds = array<i64: 16, 32>}, {transform_indices = @transform_2, window_bounds = array<i64: 16, 32>}, {pipeline_mode = #tpu.pipeline_mode<synchronous>, transform_indices = @transform_3, window_bounds = array<i64: 32, 32>}, {pipeline_mode = #tpu.pipeline_mode<synchronous>, transform_indices = @transform_4, window_bounds = array<i64: 32, 32>}, {pipeline_mode = #tpu.pipeline_mode<synchronous>, transform_indices = @transform_5, window_bounds = array<i64: 1, 32>}, {transform_indices = @transform_6, window_bounds = array<i64: 1, 1, 16>}]} {
    %c0 = arith.constant 0 : index
    %c0_0 = arith.constant 0 : index
    %0 = vector.load %arg1[%c0, %c0_0] : memref<16x32xf32, #tpu.memory_space<vmem>>, vector<16x32xf32>
    %c0_1 = arith.constant 0 : index
    %c0_2 = arith.constant 0 : index
    %1 = vector.load %arg4[%c0_1, %c0_2] : memref<32x32xf32, #tpu.memory_space<vmem>>, vector<32x32xf32>
    %cst = arith.constant dense<0.000000e+00> : vector<16x32xf32>
    %2 = tpu.matmul %0, %1, %cst {dimension_numbers = #tpu.dot_dimension_numbers<[1], [0], [0], [1], [0, 0, 1, 1], [], []>} : vector<16x32xf32>, vector<32x32xf32>, vector<16x32xf32> -> vector<16x32xf32>
    %c0_3 = arith.constant 0 : index
    %c0_4 = arith.constant 0 : index
    %3 = vector.load %arg2[%c0_3, %c0_4] : memref<16x32xf32, #tpu.memory_space<vmem>>, vector<16x32xf32>
    %c0_5 = arith.constant 0 : index
    %c0_6 = arith.constant 0 : index
    %4 = vector.load %arg5[%c0_5, %c0_6] : memref<32x32xf32, #tpu.memory_space<vmem>>, vector<32x32xf32>
    %cst_7 = arith.constant dense<0.000000e+00> : vector<16x32xf32>
    %5 = tpu.matmul %3, %4, %cst_7 {dimension_numbers = #tpu.dot_dimension_numbers<[1], [0], [0], [1], [0, 0, 1, 1], [], []>} : vector<16x32xf32>, vector<32x32xf32>, vector<16x32xf32> -> vector<16x32xf32>
    %6 = arith.addf %2, %5 : vector<16x32xf32>
    %c0_8 = arith.constant 0 : index
    %c0_9 = arith.constant 0 : index
    %7 = vector.load %arg6[%c0_8, %c0_9] : memref<1x32xf32, #tpu.memory_space<vmem>>, vector<1x32xf32>
    %8 = vector.broadcast %7 : vector<1x32xf32> to vector<16x32xf32>
    %9 = arith.addf %6, %8 : vector<16x32xf32>
    %c0_10 = arith.constant 0 : index
    %c0_11 = arith.constant 0 : index
    %10 = vector.load %arg3[%c0_10, %c0_11] : memref<16x32xf32, #tpu.memory_space<vmem>>, vector<16x32xf32>
    %11 = arith.mulf %10, %9 : vector<16x32xf32>
    %cst_12 = arith.constant dense<0.000000e+00> : vector<16xf32>
    %12 = vector.multi_reduction <add>, %11, %cst_12 [1] : vector<16x32xf32> to vector<16xf32>
    %13 = vector.shape_cast %12 : vector<16xf32> to vector<1x1x16xf32>
    %c0_13 = arith.constant 0 : index
    %c0_14 = arith.constant 0 : index
    %c0_15 = arith.constant 0 : index
    %14 = vector.load %arg7[%c0_13, %c0_14, %c0_15] : memref<1x1x16xf32, #tpu.memory_space<vmem>>, vector<1x1x16xf32>
    tpu.vector_store %arg7[%c0_13, %c0_14, %c0_15], %13 {strides = array<i32>} : memref<1x1x16xf32, #tpu.memory_space<vmem>>, vector<1x1x16xf32>,
    return
  }
  func.func @transform_0(%arg0: i32) -> (i32, i32) {
    %c0_i32 = arith.constant 0 : i32
    %c0_i32_0 = arith.constant 0 : i32
    return %arg0, %c0_i32 : i32, i32
  }
  func.func @transform_1(%arg0: i32) -> (i32, i32) {
    %c0_i32 = arith.constant 0 : i32
    %c0_i32_0 = arith.constant 0 : i32
    return %arg0, %c0_i32 : i32, i32
  }
  func.func @transform_2(%arg0: i32) -> (i32, i32) {
    %c0_i32 = arith.constant 0 : i32
    %c0_i32_0 = arith.constant 0 : i32
    return %arg0, %c0_i32 : i32, i32
  }
  func.func @transform_3(%arg0: i32) -> (i32, i32) {
    %c0_i32 = arith.constant 0 : i32
    %c0_i32_0 = arith.constant 0 : i32
    %c0_i32_1 = arith.constant 0 : i32
    return %c0_i32, %c0_i32_0 : i32, i32
  }
  func.func @transform_4(%arg0: i32) -> (i32, i32) {
    %c0_i32 = arith.constant 0 : i32
    %c0_i32_0 = arith.constant 0 : i32
    %c0_i32_1 = arith.constant 0 : i32
    return %c0_i32, %c0_i32_0 : i32, i32
  }
  func.func @transform_5(%arg0: i32) -> (i32, i32) {
    %c0_i32 = arith.constant 0 : i32
    %c0_i32_0 = arith.constant 0 : i32
    %c0_i32_1 = arith.constant 0 : i32
    return %c0_i32, %c0_i32_0 : i32, i32
  }
  func.func @transform_6(%arg0: i32) -> (i32, i32, i32) {
    %c0_i32 = arith.constant 0 : i32
    %c0_i32_0 = arith.constant 0 : i32
    %c0_i32_1 = arith.constant 0 : i32
    return %arg0, %c0_i32, %c0_i32_0 : i32, i32, i32
  }
}

</mosaic_0001>

<bundles_post_ra>
// kernel: tpu_custom_call.1
= control target key start
LH: loop header
LB: loop body
LE: loop exit
PB: predicated region body
PF: predicated region fallthrough
CT: control target
= control target key end

     0   :  { %11 = vsyncpa [#allocation3], 0  ;;  %s679_s0 = inlined_call_operand.hbm [shape: f32[16,32], index: 0, kind: input, shape index: {}]   ;;  %s680_s1 = inlined_call_operand.hbm [shape: f32[16,32], index: 1, kind: input, shape index: {}]   ;;  %s681_s2 = inlined_call_operand.hbm [shape: f32[16,32], index: 2, kind: input, shape index: {}]   ;;  %s682_s3 = inlined_call_operand.hbm [shape: f32[32,32], index: 3, kind: input, shape index: {}]   ;;  %s683_s4 = inlined_call_operand.hbm [shape: f32[32,32], index: 4, kind: input, shape index: {}]   ;;  %s684_s5 = inlined_call_operand.vmem [shape: f32[1,32], index: 5, kind: input, shape index: {}]   ;;  %s685_s6 = inlined_call_operand.hbm [shape: f32[1,1,16], index: 6, kind: output, shape index: {}]  }
   0x1   :  { %12 = vsyncpa [#allocation6], 0 }
   0x2   :  { %13 = vsyncpa [#allocation9], 0 }
   0x3   :  { %14 = vsyncpa [#allocation4], 0  ;;  %s526_s21 = smov [#allocation5]   ;;  %s527_s23 = smov [#allocation8]  }
   0x4   :  { %s32_s22 = sshll.u32 %s526_s21, 4  ;;  %s56_s24 = sshll.u32 %s527_s23, 4  ;;  %s33_s22 = int_to_ptr.vmem [resolvable:$true] %s32_s22  ;;  %s569_s24 = int_to_ptr.vmem [resolvable:$true] %s56_s24 }
   0x5   :  { %s386_s27 = scalar_lea.hbm %s680_s1, 256 }
   0x6   :  { %p387_p0 = scmp.ne.s32.totalorder %s680_s1, %s386_s27  ;;  %p390_p1 = scmp.lt.u32.totalorder %s386_s27, %s680_s1 }
   0x8   :  { %p392_p2 = pnand %p390_p1, %p387_p0 }
   0xa   :  { %395 = shalt.err (!%p392_p2)
}
   0xb   :  { %s396_s8 = scalar_lea.vmem %s33_s22, 256  ;;  %p401_p4 = scmp.lt.s32.totalorder %s33_s22, %s33_s22 }
   0xc   :  { %p397_p3 = scmp.ne.s32.totalorder %s33_s22, %s396_s8  ;;  %p402_p5 = scmp.lt.s32.totalorder %s396_s8, %s396_s8 }
   0xe   :  { %p403_p6 = por %p402_p5, %p401_p4 }
  0x10   :  { %p404_p7 = pnand %p403_p6, %p397_p3 }
  0x12   :  { %407 = shalt.err (!%p404_p7)
}
  0x13   :  { %s528_s9 = smov 128   ;;  %s529_s10 = smov 8  }
  0x14   :  { %38 = dma.hbm_to_vmem [thread:$0]  %s680_s1, 256, %s33_s22, [#allocation6], %s528_s9, %s528_s9, %s529_s10  }
  0x15   :  { %s408_s15 = scalar_lea.hbm %s682_s3, 512 }
  0x16   :  { %p409_p8 = scmp.ne.s32.totalorder %s682_s3, %s408_s15  ;;  %p412_p9 = scmp.lt.u32.totalorder %s408_s15, %s682_s3 }
  0x18   :  { %p414_p10 = pnand %p412_p9, %p409_p8 }
  0x1a   :  { %417 = shalt.err (!%p414_p10)
}
  0x1b   :  { %s418_s20 = scalar_lea.vmem %s569_s24, 512  ;;  %p423_p12 = scmp.lt.s32.totalorder %s569_s24, %s569_s24 }
  0x1c   :  { %p419_p11 = scmp.ne.s32.totalorder %s569_s24, %s418_s20  ;;  %p424_p13 = scmp.lt.s32.totalorder %s418_s20, %s418_s20 }
  0x1e   :  { %p425_p0 = por %p424_p13, %p423_p12 }
  0x20   :  { %p426_p1 = pnand %p425_p0, %p419_p11 }
  0x22   :  { %429 = shalt.err (!%p426_p1)
}
  0x23   :  { %62 = dma.hbm_to_vmem [thread:$0]  %s682_s3, 512, %s569_s24, [#allocation9], %s528_s9, %s528_s9, %s529_s10  }
  0x24   :  { %s530_s22 = smov [#allocation2]   ;;  %s531_s25 = smov [#allocation7]  }
  0x25   :  { %s20_s23 = sshll.u32 %s530_s22, 4  ;;  %s44_s26 = sshll.u32 %s531_s25, 4  ;;  %s21_s23 = int_to_ptr.vmem [resolvable:$true] %s20_s23  ;;  %s606_s26 = int_to_ptr.vmem [resolvable:$true] %s44_s26 }
  0x26   :  { %s430_s29 = scalar_lea.hbm %s679_s0, 256 }
  0x27   :  { %p431_p2 = scmp.ne.s32.totalorder %s679_s0, %s430_s29  ;;  %p434_p3 = scmp.lt.u32.totalorder %s430_s29, %s679_s0 }
  0x29   :  { %p436_p4 = pnand %p434_p3, %p431_p2 }
  0x2b   :  { %439 = shalt.err (!%p436_p4)
}
  0x2c   :  { %s440_s3 = scalar_lea.vmem %s21_s23, 256  ;;  %p445_p6 = scmp.lt.s32.totalorder %s21_s23, %s21_s23 }
  0x2d   :  { %p441_p5 = scmp.ne.s32.totalorder %s21_s23, %s440_s3  ;;  %p446_p7 = scmp.lt.s32.totalorder %s440_s3, %s440_s3 }
  0x2f   :  { %p447_p8 = por %p446_p7, %p445_p6 }
  0x31   :  { %p448_p9 = pnand %p447_p8, %p441_p5 }
  0x33   :  { %451 = shalt.err (!%p448_p9)
}
  0x34   :  { %26 = dma.hbm_to_vmem [thread:$0]  %s679_s0, 256, %s21_s23, [#allocation3], %s528_s9, %s528_s9, %s529_s10  }
  0x35   :  { %s452_s15 = scalar_lea.hbm %s681_s2, 256 }
  0x36   :  { %p453_p10 = scmp.ne.s32.totalorder %s681_s2, %s452_s15  ;;  %p456_p11 = scmp.lt.u32.totalorder %s452_s15, %s681_s2 }
  0x38   :  { %p458_p12 = pnand %p456_p11, %p453_p10 }
  0x3a   :  { %461 = shalt.err (!%p458_p12)
}
  0x3b   :  { %s462_s20 = scalar_lea.vmem %s606_s26, 256  ;;  %p467_p0 = scmp.lt.s32.totalorder %s606_s26, %s606_s26 }
  0x3c   :  { %p463_p13 = scmp.ne.s32.totalorder %s606_s26, %s462_s20  ;;  %p468_p1 = scmp.lt.s32.totalorder %s462_s20, %s462_s20 }
  0x3e   :  { %p469_p2 = por %p468_p1, %p467_p0 }
  0x40   :  { %p470_p3 = pnand %p469_p2, %p463_p13 }
  0x42   :  { %473 = shalt.err (!%p470_p3)
}
  0x43   :  { %50 = dma.hbm_to_vmem [thread:$0]  %s681_s2, 256, %s606_s26, [#allocation6], %s528_s9, %s528_s9, %s529_s10  }
  0x44   :  { %s532_s21 = smov [#allocation10]   ;;  %s474_s27 = scalar_lea.hbm %s683_s4, 512 }
  0x45   :  { %s68_s22 = sshll.u32 %s532_s21, 4  ;;  %p475_p4 = scmp.ne.s32.totalorder %s683_s4, %s474_s27  ;;  %s69_s22 = int_to_ptr.vmem [resolvable:$true] %s68_s22 }
  0x46   :  { %p478_p5 = scmp.lt.u32.totalorder %s474_s27, %s683_s4 }
  0x48   :  { %p480_p6 = pnand %p478_p5, %p475_p4 }
  0x4a   :  { %483 = shalt.err (!%p480_p6)
}
  0x4b   :  { %s484_s8 = scalar_lea.vmem %s69_s22, 512  ;;  %p489_p8 = scmp.lt.s32.totalorder %s69_s22, %s69_s22 }
  0x4c   :  { %p485_p7 = scmp.ne.s32.totalorder %s69_s22, %s484_s8  ;;  %p490_p9 = scmp.lt.s32.totalorder %s484_s8, %s484_s8 }
  0x4e   :  { %p491_p10 = por %p490_p9, %p489_p8 }
  0x50   :  { %p492_p11 = pnand %p491_p10, %p485_p7 }
  0x52   :  { %495 = shalt.err (!%p492_p11)
}
  0x53   :  { %74 = dma.hbm_to_vmem [thread:$0]  %s683_s4, 512, %s69_s22, [#allocation9], %s528_s9, %s528_s9, %s529_s10  }
  0x54   :  { %518 = dma.done.wait [#allocation3], 256  }
  0x55   :  { %519 = vsyncadd [#allocation3], 4294967040 }
  0x56   :  { %520 = dma.done.wait [#allocation6], 512  }
  0x57   :  { %521 = vsyncadd [#allocation6], 4294966784 }
  0x58   :  { %522 = dma.done.wait [#allocation9], 1024  }
  0x59   :  { %523 = vsyncadd [#allocation9], 4294966272  ;;  %v100_v0 = vld [vmem:[#allocation10] sm:$0xff]  ;;  %v101_v1 = vld [vmem:[#allocation10 + $0x8] sm:$0xff]  ;;  %vm104_vm0 = vcmask 261120   ;;  %v288_v31 = vlaneseq  ;;  %vm299_vm1 = vcmask 130112  }
  0x5a   :  { %v94_v2 = vld [vmem:[#allocation8] sm:$0xff]  ;;  %v360_v3 = vpack.c.bf16 %v101_v1, %v100_v0  ;;  %v95_v4 = vld [vmem:[#allocation8 + $0x8] sm:$0xff]  ;;  %v102_v5 = vld [vmem:[#allocation10 + $0x10] sm:$0xff]  ;;  %vm302_vm2 = vcmask 122880  }
  0x5b   :  { %v103_v6 = vld [vmem:[#allocation10 + $0x18] sm:$0xff]  ;;  %v368_v7 = vpack.c.bf16 %v95_v4, %v94_v2  ;;  %v96_v9 = vld [vmem:[#allocation8 + $0x10] sm:$0xff]  ;;  %v98_v11 = vld [vmem:[#allocation5] sm:$0xff]  ;;  %v289_v32 = vand.u32 127, %v288_v31  ;;  %v291_v33 = vshrl.u32 %v288_v31, 7 }
  0x5c   :  { %v364_v8 = vpack.c.bf16 %v103_v6, %v102_v5  ;;  %v97_v10 = vld [vmem:[#allocation8 + $0x18] sm:$0xff]  ;;  %361 = vmatprep.subr.bf16.mxu1 %v360_v3  ;;  %346 = vmatprep.mubr.msk.f32.mxu1 %vm104_vm0, %v98_v11  ;;  %v92_v13 = vld [vmem:[#allocation2] sm:$0xff]  ;;  %v99_v14 = vld [vmem:[#allocation5 + $0x8] sm:$0xff] }
  0x5d   :  { %v372_v12 = vpack.c.bf16 %v97_v10, %v96_v9  ;;  %369 = vmatprep.subr.bf16.mxu0 %v368_v7  ;;  %363 = vmatpush3.bf16.msra.mxu1 %v360_v3  ;;  %v93_v15 = vld [vmem:[#allocation2 + $0x8] sm:$0xff]  ;;  %v325_v20 = vld [vmem:[%s684_s5] ss:$0 sm:$0xff]  ;;  %v294_v34 = vadd.s32 4294967288, %v289_v32  ;;  %v292_v36 = vsub.s32 %v289_v32, %v291_v33  ;;  %s533_s5 = smov [#allocation11]  }
  0x5e   :  { %371 = vmatpush3.bf16.msra.mxu0 %v368_v7  ;;  %365 = vmatprep.subr.bf16.mxu1 %v364_v8  ;;  %v276_v23 = vld [vmem:[#allocation7] sm:$0xff]  ;;  %v277_v26 = vld [vmem:[#allocation7 + $0x8] sm:$0xff]  ;;  %s310_s10 = sshll.u32 %s533_s5, 4  ;;  %s311_s10 = int_to_ptr.vmem [resolvable:$true] %s310_s10 }
  0x5f   :  { %373 = vmatprep.subr.bf16.mxu0 %v372_v12  ;;  %357 = vmatprep.mubr.msk.f32.mxu0 %vm104_vm0, %v92_v13  ;;  %v297_v37 = vsub.s32 %v294_v34, %v291_v33  ;;  %s496_s11 = scalar_lea.vmem %s311_s10, 16  ;;  %s500_s3 = scalar_lea.vmem %s311_s10, 32 }
  0x60   :  { %p497_p12 = scmp.ne.s32.totalorder %s311_s10, %s496_s11  ;;  %p501_p13 = scmp.lt.s32.totalorder %s311_s10, %s311_s10 }
  0x61   :  { %367 = vmatpush3.bf16.msra.mxu1 %v364_v8  ;;  %p502_p0 = scmp.lt.s32.totalorder %s500_s3, %s496_s11 }
  0x62   :  { %375 = vmatpush3.bf16.msra.mxu0 %v372_v12 }
  0x63   :  { %p503_p1 = por %p502_p0, %p501_p13 }
  0x64   :  { %347 = vmatmul.mubr.msk.f32.vlgmr.msra.gmra.mrb[0].mxu1 %vm104_vm0, %v99_v14 }
  0x65   :  { %358 = vmatmul.mubr.msk.f32.vlgmr.msra.gmra.mrb[0].mxu0 %vm104_vm0, %v93_v15  ;;  %p504_p2 = pnand %p503_p1, %p497_p12 }
 0x137   :  { %v348_v16 = vpop.f32.mrb[0].mxu1 }
 0x138   :  { %v359_v17 = vpop.f32.mrb[0].mxu0  ;;  %v177_v18 = vpop.f32.mrb[1].mxu1 }
 0x139   :  { %v264_v19 = vadd.f32 %v359_v17, %v348_v16  ;;  %v258_v21 = vpop.f32.mrb[1].mxu0 }
 0x13a   :  { %v259_v22 = vadd.f32 %v258_v21, %v177_v18 }
 0x13b   :  { %v275_v24 = vadd.f32 %v325_v20, %v264_v19 }
 0x13c   :  { %v274_v25 = vadd.f32 %v325_v20, %v259_v22 }
 0x13d   :  { %v279_v29 = vmul.f32 %v277_v26, %v275_v24 }
 0x13e   :  { %v278_v27 = vmul.f32 %v276_v23, %v274_v25 }
 0x13f   :  { %v283_v30 = vsel %vm104_vm0, %v279_v29, 0.0 }
 0x140   :  { %v280_v28 = vsel %vm104_vm0, %v278_v27, 0.0 }
 0x141   :  { %281 = vadd.xlane.f32.xlu0 %v280_v28 }
 0x145   :  { %284 = vadd.xlane.f32.xlu0 %v283_v30 }
 0x1ce   :  { %v282_v35 = vpop.xlane.xlu0 %281 }
 0x1cf   :  { %v293_v39 = vrot.slane %v282_v35, %v292_v36 }
 0x1d2   :  { %v285_v38 = vpop.xlane.xlu0 %284 }
 0x1d3   :  { %v298_v40 = vrot.slane %v285_v38, %v297_v37 }
 0x1d5   :  { %v300_v41 = vsel %vm299_vm1, %v298_v40, %v293_v39 }
 0x1d6   :  { %303 = vst.msk [vmem:[#allocation11] sm:$0x1] %vm302_vm2, %v300_v41 }
 0x1d7   :  { %507 = shalt.err (!%p504_p2)
}
 0x1d8   :  { %s508_s13 = scalar_lea.hbm %s685_s6, 16 }
 0x1d9   :  { %p509_p3 = scmp.ne.s32.totalorder %s685_s6, %s508_s13  ;;  %p512_p4 = scmp.lt.u32.totalorder %s508_s13, %s685_s6 }
 0x1db   :  { %p514_p5 = pnand %p512_p4, %p509_p3 }
 0x1dd   :  { %517 = shalt.err (!%p514_p5)
}
 0x1de   :  { %313 = dma.vmem_to_hbm [thread:$0]  %s311_s10, 16, %s685_s6, [#allocation4]  }
 0x1df   :  { %524 = dma.done.wait [#allocation4], 16  }
 0x1e0   :  { %525 = vsyncadd [#allocation4], 4294967280 }
 0x1e1   :  { %317 = vsyncpa [#allocation3], 1 }
 0x1e2   :  { %318 = vsyncpa [#allocation6], 1 }
 0x1e3   :  { %319 = vsyncpa [#allocation9], 1 }
 0x1e4   :  { %320 = vsyncpa [#allocation4], 1 }

</bundles_post_ra>
